<compile_context>
chip_gen: v7x
topology: tpu7x:2x2x1
jax: 0.10.0
libtpu: 0.0.40
codegen_flags: <defaults>
</compile_context>

<pallas_src>
import jax
import jax.numpy as jnp
from jax.experimental import pallas as pl
from jax.experimental.pallas import tpu as pltpu


def _linear_kernel(x_ref, w_ref, b_ref, o_ref, acc_ref):
    """out[n, co_tile, s_tile] (+)= W[co_tile, k_tile] @ x[n, k_tile, s_tile] (+ bias).

    x_ref  : (1, c_in_t, thw)
    w_ref  : (tco, c_in_t)
    b_ref  : (tco, 1)            f32
    o_ref  : (1, tco, thw)       lane-dense spatial last dim
    acc_ref: (tco, thw)          f32 accumulator, persists across the k axis
    """
    k = pl.program_id(3)

    @pl.when(k == 0)
    def _init():
        acc_ref[...] = jnp.zeros_like(acc_ref)

    acc_ref[...] += jnp.dot(w_ref[...], x_ref[0],
                            preferred_element_type=jnp.float32)

    @pl.when(k == pl.num_programs(3) - 1)
    def _finalize():
        o_ref[0] = (acc_ref[...] + b_ref[...]).astype(o_ref.dtype)


def _vmem_capacity_bytes():
    try:
        return int(pltpu.get_tpu_info().vmem_capacity_bytes)
    except Exception:
        return 64 * 1024 * 1024        # conservative default: v7x per-TC VMEM


def _round_down(x, m):
    return (x // m) * m


def _round_up(x, m):
    return ((x + m - 1) // m) * m


def _pick_channel_tiles(c_in, c_out):
    # c_out tile: multiple of 8 (or the full c_out). Ragged tail is masked on store.
    tco = c_out if c_out <= 512 else 256
    # c_in (reduction) tile: reduction blocks cannot be masked, so the tile must
    # be a multiple of 128 that divides c_in exactly; otherwise keep the full strip.
    c_in_t = c_in
    if c_in > 1024:
        for t in range(1024, 127, -128):
            if c_in % t == 0:
                c_in_t = t
                break
    return c_in_t, tco


def _pick_spatial_tile(hw, c_in_t, tco, in_isz, out_isz, budget, cap=2048):
    """Largest MXU-friendly spatial tile that fits the VMEM budget (<= cap)."""
    # bytes per unit of thw: double-buffered x + out tiles, plus f32 accumulator
    per_thw = 2 * c_in_t * in_isz + 2 * tco * out_isz + 4 * tco
    # fixed bytes: double-buffered weight + bias
    fixed = 2 * tco * c_in_t * in_isz + 2 * tco * 4
    avail = max(budget - fixed, 0)
    t = min(cap, avail // max(per_thw, 1), _round_up(hw, 128))
    if t >= 512:
        t = _round_down(t, 512)        # multiples of 512: friendly to 2x256^2 MXUs
    else:
        t = _round_down(t, 128)
    return max(t, 128)


def linear_1x1_conv(x_nchw, weight, bias, *, compute_dtype=None, out_dtype=None):
    """1x1 Conv2d with bias, computed natively in NCHW with a Pallas TPU kernel.

    x_nchw : (N, c_in, H, W)
    weight : (c_out, c_in) or (c_out, c_in, 1, 1)
    bias   : (c_out,)
    compute_dtype : optional lower-precision matmul dtype (e.g. jnp.bfloat16);
        accumulation always stays f32.
    returns: (N, c_out, H, W)
    """
    N, c_in, H, W = x_nchw.shape
    if weight.ndim == 4:
        weight = weight.reshape(weight.shape[0], weight.shape[1])
    c_out = weight.shape[0]
    HW = H * W

    out_dtype = out_dtype or x_nchw.dtype

    x = x_nchw.reshape(N, c_in, HW)              # pure reshape, no HBM copy
    if compute_dtype is not None:
        x = x.astype(compute_dtype)
        weight = weight.astype(compute_dtype)
    b = bias.reshape(c_out, 1).astype(jnp.float32)

    in_isz = jnp.dtype(x.dtype).itemsize
    out_isz = jnp.dtype(out_dtype).itemsize

    # ---- VMEM-aware tile selection -----------------------------------------
    vmem_cap = _vmem_capacity_bytes()
    budget = int(vmem_cap * 0.7)                 # headroom for compiler scratch
    c_in_t, tco = _pick_channel_tiles(c_in, c_out)
    thw = _pick_spatial_tile(HW, c_in_t, tco, in_isz, out_isz, budget)

    co_tiles = pl.cdiv(c_out, tco)
    s_tiles = pl.cdiv(HW, thw)
    k_tiles = pl.cdiv(c_in, c_in_t)              # exact by construction

    # Keep both v7x TensorCores busy if the parallel grid would be one step.
    if N * co_tiles * s_tiles == 1 and HW > 128:
        thw = max(128, _round_up(thw // 2, 128))
        s_tiles = pl.cdiv(HW, thw)

    grid = (N, co_tiles, s_tiles, k_tiles)

    # ---- explicit VMEM limit derived from the actual footprint --------------
    footprint = (2 * (c_in_t * thw * in_isz)     # x tiles (double-buffered)
                 + 2 * (tco * thw * out_isz)     # out tiles
                 + 2 * (tco * c_in_t * in_isz)   # weight tiles
                 + 2 * (tco * 4)                 # bias tiles
                 + tco * thw * 4)                # f32 accumulator scratch
    vmem_limit = int(min(vmem_cap,
                         max(int(footprint * 1.25) + (2 << 20), 16 << 20)))

    flops = 2 * N * HW * c_in * c_out
    bytes_accessed = (N * c_in * HW * in_isz + N * c_out * HW * out_isz
                      + weight.size * in_isz + bias.size * 4)

    out = pl.pallas_call(
        _linear_kernel,
        out_shape=jax.ShapeDtypeStruct((N, c_out, HW), out_dtype),
        grid_spec=pltpu.PrefetchScalarGridSpec(
            num_scalar_prefetch=0,
            grid=grid,
            in_specs=[
                # streaming activation tile (1, c_in_t, thw)
                pl.BlockSpec((1, c_in_t, thw), lambda n, co, s, k: (n, k, s)),
                # weight tile (tco, c_in_t): constant across n/s -> no re-DMA
                pl.BlockSpec((tco, c_in_t), lambda n, co, s, k: (co, k)),
                # bias tile (tco, 1)
                pl.BlockSpec((tco, 1), lambda n, co, s, k: (co, 0)),
            ],
            # Lane-dense output; ragged spatial / c_out tails masked by Pallas.
            out_specs=pl.BlockSpec((1, tco, thw), lambda n, co, s, k: (n, co, s)),
            scratch_shapes=[pltpu.VMEM((tco, thw), jnp.float32)],
        ),
        compiler_params=pltpu.CompilerParams(
            dimension_semantics=("parallel", "parallel", "parallel", "arbitrary"),
            vmem_limit_bytes=vmem_limit),
        cost_estimate=pl.CostEstimate(
            flops=flops, transcendentals=0, bytes_accessed=bytes_accessed),
    )(x, weight, b)

    return out.reshape(N, c_out, H, W)


if __name__ == "__main__":
    # Small shapes consistent with the module's forward (NCHW input).
    N, c_in, c_out, H, W = 2, 4, 8, 16, 16

    key = jax.random.PRNGKey(0)
    kx, kw, kb = jax.random.split(key, 3)

    x = jax.random.normal(kx, (N, c_in, H, W), dtype=jnp.float32)

    # Deterministic parameter init mimicking nn.Conv2d defaults
    # (uniform bound = 1/sqrt(fan_in), fan_in = c_in * 1 * 1).
    bound = 1.0 / (c_in ** 0.5)
    weight = jax.random.uniform(kw, (c_out, c_in, 1, 1), dtype=jnp.float32,
                                minval=-bound, maxval=bound)
    bias = jax.random.uniform(kb, (c_out,), dtype=jnp.float32,
                              minval=-bound, maxval=bound)

    out = jax.block_until_ready(linear_1x1_conv(x, weight, bias))

    # Plain-JAX reference of the 1x1 conv.
    ref = (jnp.einsum("nchw,oc->nohw", x, weight.reshape(c_out, c_in))
           + bias[None, :, None, None])
    assert out.shape == (N, c_out, H, W)
    assert jnp.allclose(out, ref, atol=1e-5, rtol=1e-5)

    print("KERNEL_OK")
</pallas_src>

<mosaic_0001>
module attributes {stable_mosaic.version = 11 : i64} {
  func.func @_linear_kernel(%arg0: i32, %arg1: i32, %arg2: i32, %arg3: i32, %arg4: memref<1x4x256xf32, #tpu.memory_space<vmem>>, %arg5: memref<8x4xf32, #tpu.memory_space<vmem>>, %arg6: memref<8x1xf32, #tpu.memory_space<vmem>>, %arg7: memref<1x8x256xf32, #tpu.memory_space<vmem>>, %arg8: memref<8x256xf32, #tpu.memory_space<vmem>>) attributes {dimension_semantics = [#tpu.dimension_semantics<parallel>, #tpu.dimension_semantics<parallel>, #tpu.dimension_semantics<parallel>, #tpu.dimension_semantics<arbitrary>], iteration_bounds = array<i64: 2, 1, 1, 1>, scalar_prefetch = 0 : i64, scratch_operands = 1 : i64, tpu.core_type = #tpu.core_type<tc>, window_params = [{transform_indices = @transform_0, window_bounds = array<i64: 1, 4, 256>}, {transform_indices = @transform_1, window_bounds = array<i64: 8, 4>}, {transform_indices = @transform_2, window_bounds = array<i64: 8, 1>}, {transform_indices = @transform_3, window_bounds = array<i64: 1, 8, 256>}]} {
    %c0_i32 = arith.constant 0 : i32
    %0 = arith.cmpi eq, %arg3, %c0_i32 : i32
    %1 = arith.extui %0 : i1 to i32
    %c0_i32_0 = arith.constant 0 : i32
    %2 = arith.cmpi ne, %1, %c0_i32_0 : i32
    scf.if %2 {
      %cst_11 = arith.constant 0.000000e+00 : f32
      %13 = vector.broadcast %cst_11 : f32 to vector<8x256xf32>
      %c0_12 = arith.constant 0 : index
      %c0_13 = arith.constant 0 : index
      %14 = vector.load %arg8[%c0_12, %c0_13] : memref<8x256xf32, #tpu.memory_space<vmem>>, vector<8x256xf32>
      tpu.vector_store %arg8[%c0_12, %c0_13], %13 {strides = array<i32>} : memref<8x256xf32, #tpu.memory_space<vmem>>, vector<8x256xf32>,
    } else {
    }
    %c0 = arith.constant 0 : index
    %c0_1 = arith.constant 0 : index
    %3 = vector.load %arg8[%c0, %c0_1] : memref<8x256xf32, #tpu.memory_space<vmem>>, vector<8x256xf32>
    %c0_2 = arith.constant 0 : index
    %c0_3 = arith.constant 0 : index
    %4 = vector.load %arg5[%c0_2, %c0_3] : memref<8x4xf32, #tpu.memory_space<vmem>>, vector<8x4xf32>
    %c0_4 = arith.constant 0 : index
    %c0_5 = arith.constant 0 : index
    %c0_6 = arith.constant 0 : index
    %5 = vector.load %arg4[%c0_4, %c0_5, %c0_6] : memref<1x4x256xf32, #tpu.memory_space<vmem>>, vector<1x4x256xf32>
    %6 = vector.shape_cast %5 : vector<1x4x256xf32> to vector<4x256xf32>
    %cst = arith.constant dense<0.000000e+00> : vector<8x256xf32>
    %7 = tpu.matmul %4, %6, %cst {dimension_numbers = #tpu.dot_dimension_numbers<[1], [0], [0], [1], [0, 0, 1, 1], [], []>} : vector<8x4xf32>, vector<4x256xf32>, vector<8x256xf32> -> vector<8x256xf32>
    %8 = arith.addf %3, %7 : vector<8x256xf32>
    %c0_7 = arith.constant 0 : index
    %c0_8 = arith.constant 0 : index
    %9 = vector.load %arg8[%c0_7, %c0_8] : memref<8x256xf32, #tpu.memory_space<vmem>>, vector<8x256xf32>
    tpu.vector_store %arg8[%c0_7, %c0_8], %8 {strides = array<i32>} : memref<8x256xf32, #tpu.memory_space<vmem>>, vector<8x256xf32>,
    %c0_i32_9 = arith.constant 0 : i32
    %10 = arith.cmpi eq, %arg3, %c0_i32_9 : i32
    %11 = arith.extui %10 : i1 to i32
    %c0_i32_10 = arith.constant 0 : i32
    %12 = arith.cmpi ne, %11, %c0_i32_10 : i32
    scf.if %12 {
      %c0_11 = arith.constant 0 : index
      %c0_12 = arith.constant 0 : index
      %13 = vector.load %arg8[%c0_11, %c0_12] : memref<8x256xf32, #tpu.memory_space<vmem>>, vector<8x256xf32>
      %c0_13 = arith.constant 0 : index
      %c0_14 = arith.constant 0 : index
      %14 = vector.load %arg6[%c0_13, %c0_14] : memref<8x1xf32, #tpu.memory_space<vmem>>, vector<8x1xf32>
      %15 = vector.broadcast %14 : vector<8x1xf32> to vector<8x256xf32>
      %16 = arith.addf %13, %15 : vector<8x256xf32>
      %c0_15 = arith.constant 0 : index
      %c0_16 = arith.constant 0 : index
      %c0_17 = arith.constant 0 : index
      %17 = vector.load %arg7[%c0_15, %c0_16, %c0_17] : memref<1x8x256xf32, #tpu.memory_space<vmem>>, vector<1x8x256xf32>
      %18 = vector.shape_cast %17 : vector<1x8x256xf32> to vector<8x256xf32>
      %19 = vector.shape_cast %16 : vector<8x256xf32> to vector<1x8x256xf32>
      tpu.vector_store %arg7[%c0_15, %c0_16, %c0_17], %19 {strides = array<i32>} : memref<1x8x256xf32, #tpu.memory_space<vmem>>, vector<1x8x256xf32>,
    } else {
    }
    return
  }
  func.func @transform_0(%arg0: i32, %arg1: i32, %arg2: i32, %arg3: i32) -> (i32, i32, i32) {
    %c0_i32 = arith.constant 0 : i32
    return %arg0, %arg3, %arg2 : i32, i32, i32
  }
  func.func @transform_1(%arg0: i32, %arg1: i32, %arg2: i32, %arg3: i32) -> (i32, i32) {
    %c0_i32 = arith.constant 0 : i32
    return %arg1, %arg3 : i32, i32
  }
  func.func @transform_2(%arg0: i32, %arg1: i32, %arg2: i32, %arg3: i32) -> (i32, i32) {
    %c0_i32 = arith.constant 0 : i32
    %c0_i32_0 = arith.constant 0 : i32
    return %arg1, %c0_i32 : i32, i32
  }
  func.func @transform_3(%arg0: i32, %arg1: i32, %arg2: i32, %arg3: i32) -> (i32, i32, i32) {
    %c0_i32 = arith.constant 0 : i32
    return %arg0, %arg1, %arg2 : i32, i32, i32
  }
}

</mosaic_0001>

<bundles_post_ra>
// kernel: tpu_custom_call.1
= control target key start
LH: loop header
LB: loop body
LE: loop exit
PB: predicated region body
PF: predicated region fallthrough
CT: control target
= control target key end

     0   :  { %8 = vsyncpa [#allocation4], 0  ;;  %s828_s0 = inlined_call_operand.vmem [shape: f32[2,4,256], index: 0, kind: input, shape index: {}]   ;;  %s829_s1 = inlined_call_operand.vmem [shape: f32[8,4], index: 1, kind: input, shape index: {}]   ;;  %s830_s2 = inlined_call_operand.vmem [shape: f32[8,1], index: 2, kind: input, shape index: {}]   ;;  %s831_s3 = inlined_call_operand.hbm [shape: f32[2,8,256], index: 3, kind: output, shape index: {}]  }
   0x1   :  { %10 = vsyncpa [#allocation4 + $0x1], 0  ;;  %s710_s12 = smov 0   ;;  %s712_s13 = smov 0  }
   0x2   :  { %s714_s14 = smov 0   ;;  %s716_s15 = smov 0  }
   0x3   :  { %s718_s16 = smov 0   ;;  %s720_s17 = smov 0  }
   0x4 LB: > { %s528_s18 = sadd.s32 4294967295, %s685_s17   ;;  %s529_s19 = sadd.s32 4294967294, %s685_s17   ;;  %s685_s17 = sphi %s720_s17, %s16_s17   ;;  %s681_s16 = sphi %s718_s16, %s838_s16   ;;  %s677_s15 = sphi %s716_s15, %s837_s15   ;;  %s673_s14 = sphi %s714_s14, %s836_s14   ;;  %s669_s13 = sphi %s712_s13, %s835_s13   ;;  %s665_s12 = sphi %s710_s12, %s834_s12  }
   0x5   : > { %s42_s20 = sadd.s32 1, %s681_s16  ;;  %s137_s21 = sadd.s32 1, %s673_s14 }
   0x6   : > { %p44_p0 = scmp.ge.s32.totalorder %s42_s20, 2  ;;  %p147_p1 = scmp.ne.s32.totalorder %s673_s14, %s669_s13 }
   0x7   : > { %p148_p2 = scmp.eq.s32.totalorder %s528_s18, 1  ;;  %p153_p3 = scmp.ne.s32.totalorder %s669_s13, %s665_s12 }
   0x8   : > { %s840_s20 = smov (%p44_p0, %s42_s20), 0  ;;  %p154_p5 = scmp.eq.s32.totalorder %s529_s19, 1 }
   0x9   : > { %p750_p4 = por %p148_p2, %p147_p1  ;;  %s130_s23 = ssub.s32 %s681_s16, %s840_s20 }
   0xa   : > { %p534_p6 = scmp.ge.s32.totalorder %s685_s17, 1  ;;  %p135_p7 = scmp.eq.s32.totalorder %s130_s23, 0 }
   0xb   : > { %p757_p8 = por %p154_p5, %p153_p3  ;;  %p206_p9 = scmp.lt.s32.totalorder %s685_s17, 3 }
   0xc   : > { %s763_s25 = scalar_select %p135_p7, %s673_s14, %s137_s21  }
   0xd   : > { %p207_p10 = pnand %p534_p6, %p206_p9 }
   0xe   : > { %p250_p11 = scmp.lt.s32.totalorder (!%p207_p10), %s677_s15, 1  ;;  %v687_v0 = vmov (!%p207_p10), 0.0   ;;  %v688_v1 = vmov (!%p207_p10), 0   ;;  %v376_v2 = vld [vmem:[%s830_s2] sm:$0xff] (!%p207_p10)  ;;  %vm291_vm0 = vcmask (!%p207_p10), 1043456   ;;  %vm287_vm1 = vcmask (!%p207_p10), 31744  }
   0xf   : > { %210 = sbr.rel (%p207_p10) target bundleno = 260 (0x104), region = 32  ;;  %360 = vmatprep.mubr.f32.mxu0 (!%p207_p10), %v687_v0  ;;  %605 = vset.pattern.permute.xlu0 (!%p207_p10), %v688_v1  ;;  %v283_v5 = vld [vmem:[%s829_s1] sm:$0xff] (!%p207_p10)  ;;  %s246_s8 = sand.u32 (!%p207_p10), 1, %s669_s13  }
  0x10   : > { %379 = vperm.xlu0 (!%p207_p10), %605, %v376_v2   ;;  %s535_s9 = sshll.u32 (!%p207_p10), %s246_s8, 4  ;;  %s547_s10 = sshll.u32 (!%p207_p10), %s677_s15, 8 }
  0x11   : > { %s248_s11 = scalar_lea.vmem (!%p207_p10), [#allocation3], %s535_s9  ;;  %s781_s23 = scalar_lea.hbm (!%p207_p10), %s831_s3, %s547_s10 }
  0x12   : > { %s405_s18 = sshll.u32 (!%p207_p10), %s248_s11, 4  ;;  %s387_s26 = scalar_lea.sflag (!%p207_p10), [#allocation4], %s246_s8  ;;  %s783_s18 = int_to_ptr.vmem [resolvable:$true] %s405_s18 }
  0x13   : > { %s689_s27 = smov (!%p207_p10), [#allocation3]  }
  0x16   : > { %s251_s28 = scalar_select %p250_p11, %s677_s15, 1 }
  0x17   : > { %s607_s15 = scalar_lea.vmem %s783_s18, 256 }
  0x18   : > { %s546_s29 = sshll.u32 %s251_s28, 3  ;;  %p608_p12 = scmp.ne.s32.totalorder %s783_s18, %s607_s15 }
  0x19   : > { %s261_s5 = scalar_lea.vmem %s828_s0, %s546_s29  ;;  %s611_s28 = sshll.u32 %s689_s27, 4  ;;  %s612_s28 = int_to_ptr.vmem [resolvable:$false] %s611_s28 }
  0x1a   : > { %v284_v3 = vld [vmem:[%s261_s5] sm:$0xff]  ;;  %p609_p13 = pnand %p608_p12, %p750_p4  ;;  %s613_s29 = scalar_lea.vmem %s612_s28, 512 }
  0x1b   : > { %v286_v4 = vcombine.high %v284_v3, %v284_v3  ;;  %p614_p1 = scmp.lt.s32.totalorder %s783_s18, %s612_s28  ;;  %p615_p2 = scmp.lt.s32.totalorder %s613_s29, %s607_s15 }
  0x1c   : > { %p610_p0 = pneg %p609_p13 }
  0x1d   : > { %538 = vmatprep.subr.msk.mxu0 %vm291_vm0, %v286_v4  ;;  %p616_p3 = por %p615_p2, %p614_p1 }
  0x1e   : > { %539 = vmatpush1.msk.msra.mxu0 %vm291_vm0, %v284_v3 }
  0x1f   : > { %540 = vmatmul.mubr.msk.f32.vlgmr.msra.gmra.mrb[0].mxu0 %vm287_vm1, %v283_v5  ;;  %p617_p5 = pnand %p616_p3, %p610_p0 }
  0x8f   : > { %v380_v6 = vpop.permute.xlu0 %379 }
  0xf2   : > { %v362_v7 = vpop.f32.mrb[0].mxu0 }
  0xf3   : > { %v382_v8 = vadd.f32 %v380_v6, %v362_v7  ;;  %v364_v9 = vpop.f32.mrb[1].mxu0 }
  0xf4   : > { %v383_v10 = vadd.f32 %v380_v6, %v364_v9 }
  0xf5   : > { %384 = vst [vmem:[%s248_s11] sm:$0xff] %v382_v8 }
  0xf6   : > { %385 = vst [vmem:[%s248_s11 + $0x8] sm:$0xff] %v383_v10 }
  0xf7   : > { %620 = shalt.err (!%p617_p5)
}
  0xf8   : > { %s621_s30 = scalar_lea.hbm %s781_s23, 256  ;;  %s625_s6 = scalar_lea.hbm %s831_s3, 512 }
  0xf9   : > { %p622_p6 = scmp.ne.s32.totalorder %s781_s23, %s621_s30  ;;  %p626_p10 = scmp.lt.u32.totalorder %s781_s23, %s831_s3 }
  0xfa   : > { %p627_p11 = scmp.lt.u32.totalorder %s625_s6, %s621_s30  ;;  %p629_p13 = scmp.lt.u32.totalorder %s621_s30, %s781_s23 }
  0xfb   : > { %p623_p7 = pnand %p622_p6, %p750_p4 }
  0xfc   : > { %p628_p12 = por %p627_p11, %p626_p10 }
  0xfd   : > { %p624_p9 = pneg %p623_p7 }
  0xfe   : > { %p630_p0 = por %p629_p13, %p628_p12 }
 0x100   : > { %p631_p1 = pnand %p630_p0, %p624_p9 }
 0x102   : > { %634 = shalt.err (!%p631_p1)
}
 0x103   : > { %548 = dma.vmem_to_hbm [thread:$0]  (%p750_p4), %s783_s18, 256, %s781_s23, %s387_s26  }
 0x104 PF: > { %p554_p2 = scmp.ge.s32.totalorder %s685_s17, 2  ;;  %s417_s9 = sand.u32 1, %s665_s12  }
 0x105   : > { %s418_s10 = scalar_lea.sflag [#allocation4], %s417_s9 }
 0x106   : > { %p551_p3 = pnand %p554_p2, %p757_p8 }
 0x108   : > { %660 = dma.done.wait (!%p551_p3), %s418_s10, 256  }
 0x109   : > { %662 = vsyncadd (!%p551_p3), %s418_s10, 4294967040  ;;  %s16_s17 = sadd.s32 1, %s685_s17   ;;  %s834_s12 = smov %s669_s13 }
 0x10a   : > { %p13_p5 = scmp.ge.s32.totalorder %s16_s17, 4   ;;  %s835_s13 = smov %s673_s14 }
 0x10b   : > { %s836_s14 = smov %s763_s25  ;;  %s837_s15 = smov %s681_s16 }
 0x10c   : > { %s838_s16 = smov %s840_s20  ;;  %15 = sbr.rel (!%p13_p5) target bundleno = 4 (0x4), region = 81 }
 0x113   :  { %423 = vsyncpa [#allocation4], 1 }
 0x114   :  { %425 = vsyncpa [#allocation4 + $0x1], 1 }

</bundles_post_ra>
